<compile_context>
chip_gen: v5e
topology: v5e:2x2
jax: 0.10.0
libtpu: 0.0.40
codegen_flags: <defaults>
</compile_context>

<pallas_src>
import functools

import jax
import jax.numpy as jnp
import numpy as np
from jax.experimental import pallas as pl
from jax.experimental.pallas import tpu as pltpu


# ----------------------------------------------------------------------------
# Fused kernel: conv (one matmul) + pixel-shuffle + BatchNorm + ReLU
# ----------------------------------------------------------------------------
def _psblock_kernel(a_ref, b_ref, p_ref, o_ref, *, c_bn, lane_block, count, eps):
    # a_ref: (M, Kp)       bf16  row-im2col of the padded input (K zero-padded)
    # b_ref: (Kp, C*LB)    bf16  Toeplitz conv weights, columns ordered (c,i,w,j)
    # p_ref: (3, C*LB)     f32   rows = (bias, gamma, beta), broadcast over (i,w,j)
    # o_ref: (M, C*LB)     f32   lane-dense output block (NCHW permute in wrapper)
    acc = jnp.dot(a_ref[...], b_ref[...], preferred_element_type=jnp.float32)
    p = p_ref[...]
    acc = acc + p[0:1, :]                                 # + conv bias

    # BatchNorm batch statistics (biased var, training mode):
    # reduce rows (sublanes) first -> single (1, C*LB) row per statistic,
    # then finish the per-channel 64-lane reductions on that one row.
    s = jnp.sum(acc, axis=0, keepdims=True)               # (1, C*LB)
    sq = jnp.sum(acc * acc, axis=0, keepdims=True)        # (1, C*LB)

    lanes = c_bn * lane_block
    lane_id = jax.lax.broadcasted_iota(jnp.int32, (1, lanes), 1)
    mean_vec = jnp.zeros((1, lanes), jnp.float32)
    inv_vec = jnp.zeros((1, lanes), jnp.float32)
    inv_count = 1.0 / count
    for c in range(c_bn):                                 # static, tiny loop
        lo = c * lane_block
        m = jnp.sum(s[:, lo:lo + lane_block], keepdims=True) * inv_count
        ex2 = jnp.sum(sq[:, lo:lo + lane_block], keepdims=True) * inv_count
        var = jnp.maximum(ex2 - m * m, 0.0)               # biased variance
        iv = jax.lax.rsqrt(var + eps)
        seg = (lane_id >= lo) & (lane_id < lo + lane_block)
        mean_vec = jnp.where(seg, m, mean_vec)
        inv_vec = jnp.where(seg, iv, inv_vec)

    scale = inv_vec * p[1:2, :]                           # gamma / sqrt(var+eps)
    shift = p[2:3, :] - mean_vec * scale                  # beta - mean*scale
    o_ref[...] = jnp.maximum(acc * scale + shift, 0.0).astype(o_ref.dtype)


# ----------------------------------------------------------------------------
# Wrapper: parameter/input layout prep (tiny, XLA-fused) + pallas_call
# ----------------------------------------------------------------------------
def ps_block_forward(x_nchw, params, scale_factor, eps=1e-5):
    """PSBlock forward (default config: relu + batch norm), NCHW in/out."""
    w_oihw = params["w_oihw"]                      # (C*r*r, Cin, 3, 3)
    bias = params["bias"]
    gamma = params["gamma"]
    beta = params["beta"]

    N, Cin, H, W = x_nchw.shape
    r = scale_factor
    C = w_oihw.shape[0] // (r * r)                 # BN channels
    LB = r * W * r                                 # lanes per BN channel
    K = 3 * (W + 2) * Cin                          # contraction dim (216)
    Kp = max(128, ((K + 127) // 128) * 128)        # pad to lane multiple (256)
    M = N * H

    # --- input: row-im2col (one cheap layout pass over a tiny tensor) -------
    xt = jnp.transpose(x_nchw, (0, 2, 3, 1))                        # NHWC
    xp = jnp.pad(xt, ((0, 0), (1, 1), (1, 1), (0, 0)))              # (N,H+2,W+2,Cin)
    a = jnp.concatenate(
        [xp[:, kh:kh + H].reshape(M, (W + 2) * Cin) for kh in range(3)],
        axis=1)                                                     # (M, K)
    a = jnp.pad(a, ((0, 0), (0, Kp - K))).astype(jnp.bfloat16)      # (M, Kp)

    # --- weights: Toeplitz expansion with pixel-shuffle column ordering -----
    # B[kh*(W+2)*Cin + win*Cin + cin, c*LB + i*(W*r) + w*r + j]
    #   = weight[c*r*r + i*r + j, cin, kh, win - w]   (0 <= win-w <= 2 else 0)
    sel = np.zeros((W + 2, W, 3), np.float32)
    for kw in range(3):
        sel[np.arange(W) + kw, np.arange(W), kw] = 1.0
    wr = w_oihw.reshape(C, r, r, Cin, 3, 3)                         # (c,i,j,cin,kh,kw)
    b7 = jnp.einsum("vwk,cijnhk->hvnciwj", jnp.asarray(sel), wr)    # (3,W+2,Cin,C,r,W,r)
    bmat = b7.reshape(K, C * LB)
    bmat = jnp.pad(bmat, ((0, Kp - K), (0, 0))).astype(jnp.bfloat16)  # (Kp, C*LB)

    # --- bias/gamma/beta as one (3, C*LB) lane-aligned parameter block ------
    bias_l = jnp.broadcast_to(bias.reshape(C, r, 1, r),
                              (C, r, W, r)).reshape(1, C * LB)
    gamma_l = jnp.broadcast_to(gamma[:, None], (C, LB)).reshape(1, C * LB)
    beta_l = jnp.broadcast_to(beta[:, None], (C, LB)).reshape(1, C * LB)
    p = jnp.concatenate([bias_l, gamma_l, beta_l], axis=0).astype(jnp.float32)

    kernel = functools.partial(_psblock_kernel, c_bn=C, lane_block=LB,
                               count=M * LB, eps=eps)
    out = pl.pallas_call(
        kernel,
        out_shape=jax.ShapeDtypeStruct((M, C * LB), jnp.float32),
        grid=(1,),
        in_specs=[
            pl.BlockSpec((M, Kp), lambda g: (0, 0)),
            pl.BlockSpec((Kp, C * LB), lambda g: (0, 0)),
            pl.BlockSpec((3, C * LB), lambda g: (0, 0)),
        ],
        out_specs=pl.BlockSpec((M, C * LB), lambda g: (0, 0)),
        compiler_params=pltpu.CompilerParams(
            dimension_semantics=("arbitrary",)),
    )(a, bmat, p)

    # Lanes are ordered (c, i, w, j); the NCHW permute is a tiny XLA copy.
    out = out.reshape(N, H, C, r, W, r).transpose(0, 2, 1, 3, 4, 5)
    return out.reshape(N, C, H * r, W * r)
    # TODO(synk): non-default PSBlock branches (prelu/lrelu/tanh/sigmoid,
    # instance/weight norm) and BatchNorm running-stat updates are not part of
    # the default forward benchmarked here and are not implemented.


if __name__ == "__main__":
    in_size, out_size, scale = 4, 4, 2
    N, H, W = 2, 16, 16

    key = jax.random.PRNGKey(0)
    kx, kw, kb = jax.random.split(key, 3)
    x = jax.random.normal(kx, (N, in_size, H, W), jnp.float32)

    # Deterministic synthetic parameters (PyTorch conv weight layout OIHW).
    w_oihw = 0.1 * jax.random.normal(
        kw, (out_size * scale ** 2, in_size, 3, 3), jnp.float32)
    bias = 0.1 * jax.random.normal(kb, (out_size * scale ** 2,), jnp.float32)
    params = dict(
        w_oihw=w_oihw,
        bias=bias,
        gamma=jnp.ones((out_size,), jnp.float32),   # BatchNorm2d default init
        beta=jnp.zeros((out_size,), jnp.float32),
    )

    fwd = jax.jit(functools.partial(ps_block_forward, scale_factor=scale))
    out = jax.block_until_ready(fwd(x, params))

    # Pure-JAX reference for validation.
    x_nhwc = jnp.transpose(x, (0, 2, 3, 1))
    w_hwio = jnp.transpose(w_oihw, (2, 3, 1, 0))
    ref = jax.lax.conv_general_dilated(
        x_nhwc, w_hwio, (1, 1), "SAME",
        dimension_numbers=("NHWC", "HWIO", "NHWC"),
        precision=jax.lax.Precision.HIGHEST) + bias
    ref = ref.reshape(N, H, W, out_size, scale, scale)
    ref = jnp.transpose(ref, (0, 1, 4, 2, 5, 3)).reshape(
        N, H * scale, W * scale, out_size)                 # pixel shuffle, NHWC
    mean = ref.mean(axis=(0, 1, 2), keepdims=True)
    var = ref.var(axis=(0, 1, 2), keepdims=True)           # biased, as BN uses
    ref = (ref - mean) / jnp.sqrt(var + 1e-5) * params["gamma"] + params["beta"]
    ref = jnp.maximum(ref, 0.0)
    ref = jnp.transpose(ref, (0, 3, 1, 2))                  # NHWC -> NCHW

    assert out.shape == (N, out_size, H * scale, W * scale), out.shape
    np.testing.assert_allclose(np.asarray(out), np.asarray(ref),
                               rtol=2e-2, atol=2e-2)
    print("KERNEL_OK")
</pallas_src>

<mosaic_0001>
module attributes {stable_mosaic.version = 11 : i64} {
  func.func @_psblock_kernel(%arg0: i32, %arg1: memref<32x256xbf16, #tpu.memory_space<vmem>>, %arg2: memref<256x256xbf16, #tpu.memory_space<vmem>>, %arg3: memref<3x256xf32, #tpu.memory_space<vmem>>, %arg4: memref<32x256xf32, #tpu.memory_space<vmem>>) attributes {dimension_semantics = [#tpu.dimension_semantics<arbitrary>], iteration_bounds = array<i64: 1>, scalar_prefetch = 0 : i64, scratch_operands = 0 : i64, tpu.core_type = #tpu.core_type<tc>, window_params = [{pipeline_mode = #tpu.pipeline_mode<synchronous>, transform_indices = @transform_0, window_bounds = array<i64: 32, 256>}, {pipeline_mode = #tpu.pipeline_mode<synchronous>, transform_indices = @transform_1, window_bounds = array<i64: 256, 256>}, {pipeline_mode = #tpu.pipeline_mode<synchronous>, transform_indices = @transform_2, window_bounds = array<i64: 3, 256>}, {pipeline_mode = #tpu.pipeline_mode<synchronous>, transform_indices = @transform_3, window_bounds = array<i64: 32, 256>}]} {
    %c0 = arith.constant 0 : index
    %c0_0 = arith.constant 0 : index
    %0 = vector.load %arg1[%c0, %c0_0] : memref<32x256xbf16, #tpu.memory_space<vmem>>, vector<32x256xbf16>
    %c0_1 = arith.constant 0 : index
    %c0_2 = arith.constant 0 : index
    %1 = vector.load %arg2[%c0_1, %c0_2] : memref<256x256xbf16, #tpu.memory_space<vmem>>, vector<256x256xbf16>
    %cst = arith.constant dense<0.000000e+00> : vector<32x256xf32>
    %2 = tpu.matmul %0, %1, %cst {dimension_numbers = #tpu.dot_dimension_numbers<[1], [0], [0], [1], [0, 0, 1, 1], [], []>} : vector<32x256xbf16>, vector<256x256xbf16>, vector<32x256xf32> -> vector<32x256xf32>
    %c0_3 = arith.constant 0 : index
    %c0_4 = arith.constant 0 : index
    %3 = vector.load %arg3[%c0_3, %c0_4] : memref<3x256xf32, #tpu.memory_space<vmem>>, vector<3x256xf32>
    %4 = vector.extract_strided_slice %3 {offsets = [0, 0], sizes = [1, 256], strides = [1, 1]} : vector<3x256xf32> to vector<1x256xf32>
    %5 = vector.broadcast %4 : vector<1x256xf32> to vector<32x256xf32>
    %6 = arith.addf %2, %5 : vector<32x256xf32>
    %cst_5 = arith.constant dense<0.000000e+00> : vector<256xf32>
    %7 = vector.multi_reduction <add>, %6, %cst_5 [0] : vector<32x256xf32> to vector<256xf32>
    %8 = vector.shape_cast %7 : vector<256xf32> to vector<1x256xf32>
    %9 = arith.mulf %6, %6 : vector<32x256xf32>
    %cst_6 = arith.constant dense<0.000000e+00> : vector<256xf32>
    %10 = vector.multi_reduction <add>, %9, %cst_6 [0] : vector<32x256xf32> to vector<256xf32>
    %11 = vector.shape_cast %10 : vector<256xf32> to vector<1x256xf32>
    %12 = tpu.iota {dimensions = array<i32: 1>} : vector<1x256xi32>
    %cst_7 = arith.constant 0.000000e+00 : f32
    %13 = vector.broadcast %cst_7 : f32 to vector<1x256xf32>
    %cst_8 = arith.constant 0.000000e+00 : f32
    %14 = vector.broadcast %cst_8 : f32 to vector<1x256xf32>
    %15 = vector.extract_strided_slice %8 {offsets = [0, 0], sizes = [1, 64], strides = [1, 1]} : vector<1x256xf32> to vector<1x64xf32>
    %16 = vector.shape_cast %15 : vector<1x64xf32> to vector<1x1x64xf32>
    %cst_9 = arith.constant dense<0.000000e+00> : vector<1xf32>
    %17 = vector.multi_reduction <add>, %16, %cst_9 [1, 2] : vector<1x1x64xf32> to vector<1xf32>
    %18 = vector.shape_cast %17 : vector<1xf32> to vector<1x1x1xf32>
    %19 = vector.extract %18[0, 0, 0] : f32 from vector<1x1x1xf32>
    %20 = vector.broadcast %19 : f32 to vector<1x1xf32>
    %cst_10 = arith.constant 4.8828125E-4 : f32
    %21 = vector.broadcast %cst_10 : f32 to vector<1x1xf32>
    %22 = arith.mulf %20, %21 : vector<1x1xf32>
    %23 = vector.extract_strided_slice %11 {offsets = [0, 0], sizes = [1, 64], strides = [1, 1]} : vector<1x256xf32> to vector<1x64xf32>
    %24 = vector.shape_cast %23 : vector<1x64xf32> to vector<1x1x64xf32>
    %cst_11 = arith.constant dense<0.000000e+00> : vector<1xf32>
    %25 = vector.multi_reduction <add>, %24, %cst_11 [1, 2] : vector<1x1x64xf32> to vector<1xf32>
    %26 = vector.shape_cast %25 : vector<1xf32> to vector<1x1x1xf32>
    %27 = vector.extract %26[0, 0, 0] : f32 from vector<1x1x1xf32>
    %28 = vector.broadcast %27 : f32 to vector<1x1xf32>
    %cst_12 = arith.constant 4.8828125E-4 : f32
    %29 = vector.broadcast %cst_12 : f32 to vector<1x1xf32>
    %30 = arith.mulf %28, %29 : vector<1x1xf32>
    %31 = arith.mulf %22, %22 : vector<1x1xf32>
    %32 = arith.subf %30, %31 : vector<1x1xf32>
    %cst_13 = arith.constant 0.000000e+00 : f32
    %33 = vector.broadcast %cst_13 : f32 to vector<1x1xf32>
    %34 = arith.maximumf %32, %33 : vector<1x1xf32>
    %cst_14 = arith.constant 9.99999974E-6 : f32
    %35 = vector.broadcast %cst_14 : f32 to vector<1x1xf32>
    %36 = arith.addf %34, %35 : vector<1x1xf32>
    %37 = math.rsqrt %36 : vector<1x1xf32>
    %c0_i32 = arith.constant 0 : i32
    %38 = vector.broadcast %c0_i32 : i32 to vector<1x256xi32>
    %39 = arith.cmpi sge, %12, %38 : vector<1x256xi32>
    %c64_i32 = arith.constant 64 : i32
    %40 = vector.broadcast %c64_i32 : i32 to vector<1x256xi32>
    %41 = arith.cmpi slt, %12, %40 : vector<1x256xi32>
    %42 = arith.andi %39, %41 : vector<1x256xi1>
    %43 = vector.shape_cast %22 : vector<1x1xf32> to vector<1x1xf32>
    %44 = vector.broadcast %43 : vector<1x1xf32> to vector<1x256xf32>
    %45 = arith.select %42, %44, %13 : vector<1x256xi1>, vector<1x256xf32>
    %46 = vector.shape_cast %37 : vector<1x1xf32> to vector<1x1xf32>
    %47 = vector.broadcast %46 : vector<1x1xf32> to vector<1x256xf32>
    %48 = arith.select %42, %47, %14 : vector<1x256xi1>, vector<1x256xf32>
    %49 = vector.extract_strided_slice %8 {offsets = [0, 64], sizes = [1, 64], strides = [1, 1]} : vector<1x256xf32> to vector<1x64xf32>
    %50 = vector.shape_cast %49 : vector<1x64xf32> to vector<1x1x64xf32>
    %cst_15 = arith.constant dense<0.000000e+00> : vector<1xf32>
    %51 = vector.multi_reduction <add>, %50, %cst_15 [1, 2] : vector<1x1x64xf32> to vector<1xf32>
    %52 = vector.shape_cast %51 : vector<1xf32> to vector<1x1x1xf32>
    %53 = vector.extract %52[0, 0, 0] : f32 from vector<1x1x1xf32>
    %54 = vector.broadcast %53 : f32 to vector<1x1xf32>
    %cst_16 = arith.constant 4.8828125E-4 : f32
    %55 = vector.broadcast %cst_16 : f32 to vector<1x1xf32>
    %56 = arith.mulf %54, %55 : vector<1x1xf32>
    %57 = vector.extract_strided_slice %11 {offsets = [0, 64], sizes = [1, 64], strides = [1, 1]} : vector<1x256xf32> to vector<1x64xf32>
    %58 = vector.shape_cast %57 : vector<1x64xf32> to vector<1x1x64xf32>
    %cst_17 = arith.constant dense<0.000000e+00> : vector<1xf32>
    %59 = vector.multi_reduction <add>, %58, %cst_17 [1, 2] : vector<1x1x64xf32> to vector<1xf32>
    %60 = vector.shape_cast %59 : vector<1xf32> to vector<1x1x1xf32>
    %61 = vector.extract %60[0, 0, 0] : f32 from vector<1x1x1xf32>
    %62 = vector.broadcast %61 : f32 to vector<1x1xf32>
    %cst_18 = arith.constant 4.8828125E-4 : f32
    %63 = vector.broadcast %cst_18 : f32 to vector<1x1xf32>
    %64 = arith.mulf %62, %63 : vector<1x1xf32>
    %65 = arith.mulf %56, %56 : vector<1x1xf32>
    %66 = arith.subf %64, %65 : vector<1x1xf32>
    %cst_19 = arith.constant 0.000000e+00 : f32
    %67 = vector.broadcast %cst_19 : f32 to vector<1x1xf32>
    %68 = arith.maximumf %66, %67 : vector<1x1xf32>
    %cst_20 = arith.constant 9.99999974E-6 : f32
    %69 = vector.broadcast %cst_20 : f32 to vector<1x1xf32>
    %70 = arith.addf %68, %69 : vector<1x1xf32>
    %71 = math.rsqrt %70 : vector<1x1xf32>
    %c64_i32_21 = arith.constant 64 : i32
    %72 = vector.broadcast %c64_i32_21 : i32 to vector<1x256xi32>
    %73 = arith.cmpi sge, %12, %72 : vector<1x256xi32>
    %c128_i32 = arith.constant 128 : i32
    %74 = vector.broadcast %c128_i32 : i32 to vector<1x256xi32>
    %75 = arith.cmpi slt, %12, %74 : vector<1x256xi32>
    %76 = arith.andi %73, %75 : vector<1x256xi1>
    %77 = vector.shape_cast %56 : vector<1x1xf32> to vector<1x1xf32>
    %78 = vector.broadcast %77 : vector<1x1xf32> to vector<1x256xf32>
    %79 = arith.select %76, %78, %45 : vector<1x256xi1>, vector<1x256xf32>
    %80 = vector.shape_cast %71 : vector<1x1xf32> to vector<1x1xf32>
    %81 = vector.broadcast %80 : vector<1x1xf32> to vector<1x256xf32>
    %82 = arith.select %76, %81, %48 : vector<1x256xi1>, vector<1x256xf32>
    %83 = vector.extract_strided_slice %8 {offsets = [0, 128], sizes = [1, 64], strides = [1, 1]} : vector<1x256xf32> to vector<1x64xf32>
    %84 = vector.shape_cast %83 : vector<1x64xf32> to vector<1x1x64xf32>
    %cst_22 = arith.constant dense<0.000000e+00> : vector<1xf32>
    %85 = vector.multi_reduction <add>, %84, %cst_22 [1, 2] : vector<1x1x64xf32> to vector<1xf32>
    %86 = vector.shape_cast %85 : vector<1xf32> to vector<1x1x1xf32>
    %87 = vector.extract %86[0, 0, 0] : f32 from vector<1x1x1xf32>
    %88 = vector.broadcast %87 : f32 to vector<1x1xf32>
    %cst_23 = arith.constant 4.8828125E-4 : f32
    %89 = vector.broadcast %cst_23 : f32 to vector<1x1xf32>
    %90 = arith.mulf %88, %89 : vector<1x1xf32>
    %91 = vector.extract_strided_slice %11 {offsets = [0, 128], sizes = [1, 64], strides = [1, 1]} : vector<1x256xf32> to vector<1x64xf32>
    %92 = vector.shape_cast %91 : vector<1x64xf32> to vector<1x1x64xf32>
    %cst_24 = arith.constant dense<0.000000e+00> : vector<1xf32>
    %93 = vector.multi_reduction <add>, %92, %cst_24 [1, 2] : vector<1x1x64xf32> to vector<1xf32>
    %94 = vector.shape_cast %93 : vector<1xf32> to vector<1x1x1xf32>
    %95 = vector.extract %94[0, 0, 0] : f32 from vector<1x1x1xf32>
    %96 = vector.broadcast %95 : f32 to vector<1x1xf32>
    %cst_25 = arith.constant 4.8828125E-4 : f32
    %97 = vector.broadcast %cst_25 : f32 to vector<1x1xf32>
    %98 = arith.mulf %96, %97 : vector<1x1xf32>
    %99 = arith.mulf %90, %90 : vector<1x1xf32>
    %100 = arith.subf %98, %99 : vector<1x1xf32>
    %cst_26 = arith.constant 0.000000e+00 : f32
    %101 = vector.broadcast %cst_26 : f32 to vector<1x1xf32>
    %102 = arith.maximumf %100, %101 : vector<1x1xf32>
    %cst_27 = arith.constant 9.99999974E-6 : f32
    %103 = vector.broadcast %cst_27 : f32 to vector<1x1xf32>
    %104 = arith.addf %102, %103 : vector<1x1xf32>
    %105 = math.rsqrt %104 : vector<1x1xf32>
    %c128_i32_28 = arith.constant 128 : i32
    %106 = vector.broadcast %c128_i32_28 : i32 to vector<1x256xi32>
    %107 = arith.cmpi sge, %12, %106 : vector<1x256xi32>
    %c192_i32 = arith.constant 192 : i32
    %108 = vector.broadcast %c192_i32 : i32 to vector<1x256xi32>
    %109 = arith.cmpi slt, %12, %108 : vector<1x256xi32>
    %110 = arith.andi %107, %109 : vector<1x256xi1>
    %111 = vector.shape_cast %90 : vector<1x1xf32> to vector<1x1xf32>
    %112 = vector.broadcast %111 : vector<1x1xf32> to vector<1x256xf32>
    %113 = arith.select %110, %112, %79 : vector<1x256xi1>, vector<1x256xf32>
    %114 = vector.shape_cast %105 : vector<1x1xf32> to vector<1x1xf32>
    %115 = vector.broadcast %114 : vector<1x1xf32> to vector<1x256xf32>
    %116 = arith.select %110, %115, %82 : vector<1x256xi1>, vector<1x256xf32>
    %117 = vector.extract_strided_slice %8 {offsets = [0, 192], sizes = [1, 64], strides = [1, 1]} : vector<1x256xf32> to vector<1x64xf32>
    %118 = vector.shape_cast %117 : vector<1x64xf32> to vector<1x1x64xf32>
    %cst_29 = arith.constant dense<0.000000e+00> : vector<1xf32>
    %119 = vector.multi_reduction <add>, %118, %cst_29 [1, 2] : vector<1x1x64xf32> to vector<1xf32>
    %120 = vector.shape_cast %119 : vector<1xf32> to vector<1x1x1xf32>
    %121 = vector.extract %120[0, 0, 0] : f32 from vector<1x1x1xf32>
    %122 = vector.broadcast %121 : f32 to vector<1x1xf32>
    %cst_30 = arith.constant 4.8828125E-4 : f32
    %123 = vector.broadcast %cst_30 : f32 to vector<1x1xf32>
    %124 = arith.mulf %122, %123 : vector<1x1xf32>
    %125 = vector.extract_strided_slice %11 {offsets = [0, 192], sizes = [1, 64], strides = [1, 1]} : vector<1x256xf32> to vector<1x64xf32>
    %126 = vector.shape_cast %125 : vector<1x64xf32> to vector<1x1x64xf32>
    %cst_31 = arith.constant dense<0.000000e+00> : vector<1xf32>
    %127 = vector.multi_reduction <add>, %126, %cst_31 [1, 2] : vector<1x1x64xf32> to vector<1xf32>
    %128 = vector.shape_cast %127 : vector<1xf32> to vector<1x1x1xf32>
    %129 = vector.extract %128[0, 0, 0] : f32 from vector<1x1x1xf32>
    %130 = vector.broadcast %129 : f32 to vector<1x1xf32>
    %cst_32 = arith.constant 4.8828125E-4 : f32
    %131 = vector.broadcast %cst_32 : f32 to vector<1x1xf32>
    %132 = arith.mulf %130, %131 : vector<1x1xf32>
    %133 = arith.mulf %124, %124 : vector<1x1xf32>
    %134 = arith.subf %132, %133 : vector<1x1xf32>
    %cst_33 = arith.constant 0.000000e+00 : f32
    %135 = vector.broadcast %cst_33 : f32 to vector<1x1xf32>
    %136 = arith.maximumf %134, %135 : vector<1x1xf32>
    %cst_34 = arith.constant 9.99999974E-6 : f32
    %137 = vector.broadcast %cst_34 : f32 to vector<1x1xf32>
    %138 = arith.addf %136, %137 : vector<1x1xf32>
    %139 = math.rsqrt %138 : vector<1x1xf32>
    %c192_i32_35 = arith.constant 192 : i32
    %140 = vector.broadcast %c192_i32_35 : i32 to vector<1x256xi32>
    %141 = arith.cmpi sge, %12, %140 : vector<1x256xi32>
    %c256_i32 = arith.constant 256 : i32
    %142 = vector.broadcast %c256_i32 : i32 to vector<1x256xi32>
    %143 = arith.cmpi slt, %12, %142 : vector<1x256xi32>
    %144 = arith.andi %141, %143 : vector<1x256xi1>
    %145 = vector.shape_cast %124 : vector<1x1xf32> to vector<1x1xf32>
    %146 = vector.broadcast %145 : vector<1x1xf32> to vector<1x256xf32>
    %147 = arith.select %144, %146, %113 : vector<1x256xi1>, vector<1x256xf32>
    %148 = vector.shape_cast %139 : vector<1x1xf32> to vector<1x1xf32>
    %149 = vector.broadcast %148 : vector<1x1xf32> to vector<1x256xf32>
    %150 = arith.select %144, %149, %116 : vector<1x256xi1>, vector<1x256xf32>
    %151 = vector.extract_strided_slice %3 {offsets = [1, 0], sizes = [1, 256], strides = [1, 1]} : vector<3x256xf32> to vector<1x256xf32>
    %152 = arith.mulf %150, %151 : vector<1x256xf32>
    %153 = vector.extract_strided_slice %3 {offsets = [2, 0], sizes = [1, 256], strides = [1, 1]} : vector<3x256xf32> to vector<1x256xf32>
    %154 = arith.mulf %147, %152 : vector<1x256xf32>
    %155 = arith.subf %153, %154 : vector<1x256xf32>
    %156 = vector.broadcast %152 : vector<1x256xf32> to vector<32x256xf32>
    %157 = arith.mulf %6, %156 : vector<32x256xf32>
    %158 = vector.broadcast %155 : vector<1x256xf32> to vector<32x256xf32>
    %159 = arith.addf %157, %158 : vector<32x256xf32>
    %cst_36 = arith.constant 0.000000e+00 : f32
    %160 = vector.broadcast %cst_36 : f32 to vector<32x256xf32>
    %161 = arith.maximumf %159, %160 : vector<32x256xf32>
    %c0_37 = arith.constant 0 : index
    %c0_38 = arith.constant 0 : index
    %162 = vector.load %arg4[%c0_37, %c0_38] : memref<32x256xf32, #tpu.memory_space<vmem>>, vector<32x256xf32>
    tpu.vector_store %arg4[%c0_37, %c0_38], %161 {strides = array<i32>} : memref<32x256xf32, #tpu.memory_space<vmem>>, vector<32x256xf32>,
    return
  }
  func.func @transform_0(%arg0: i32) -> (i32, i32) {
    %c0_i32 = arith.constant 0 : i32
    %c0_i32_0 = arith.constant 0 : i32
    %c0_i32_1 = arith.constant 0 : i32
    return %c0_i32, %c0_i32_0 : i32, i32
  }
  func.func @transform_1(%arg0: i32) -> (i32, i32) {
    %c0_i32 = arith.constant 0 : i32
    %c0_i32_0 = arith.constant 0 : i32
    %c0_i32_1 = arith.constant 0 : i32
    return %c0_i32, %c0_i32_0 : i32, i32
  }
  func.func @transform_2(%arg0: i32) -> (i32, i32) {
    %c0_i32 = arith.constant 0 : i32
    %c0_i32_0 = arith.constant 0 : i32
    %c0_i32_1 = arith.constant 0 : i32
    return %c0_i32, %c0_i32_0 : i32, i32
  }
  func.func @transform_3(%arg0: i32) -> (i32, i32) {
    %c0_i32 = arith.constant 0 : i32
    %c0_i32_0 = arith.constant 0 : i32
    %c0_i32_1 = arith.constant 0 : i32
    return %c0_i32, %c0_i32_0 : i32, i32
  }
}

</mosaic_0001>

<bundles_post_ra>
// kernel: ps_block_forward.1
= control target key start
LH: loop header
LB: loop body
LE: loop exit
PB: predicated region body
PF: predicated region fallthrough
CT: control target
= control target key end

     0   :  { %vm361_vm0 = vcmask 516096   ;;  %s1193_s1 = inlined_call_operand.vmem [shape: bf16[256,256], index: 1, kind: input, shape index: {}]   ;;  %s1194_s0 = inlined_call_operand.vmem [shape: bf16[32,256], index: 0, kind: input, shape index: {}]   ;;  %s1195_s2 = inlined_call_operand.vmem [shape: f32[3,256], index: 2, kind: input, shape index: {}]   ;;  %s1196_s3 = inlined_call_operand.vmem [shape: f32[32,256], index: 3, kind: output, shape index: {}]  }
   0x1   :  { %v705_v0 = vld [vmem:[%s1193_s1 + $0x70] sm:$0xf]  ;;  %v794_v1 = vld [vmem:[%s1193_s1 + $0x74] sm:$0xf0]  ;;  %v793_v5 = vld [vmem:[%s1193_s1 + $0x74] sm:$0xf] }
   0x2   :  { %v769_v2 = vld [vmem:[%s1193_s1 + $0xf0] sm:$0xf]  ;;  %v706_v3 = vor.u32 %v794_v1, %v705_v0  ;;  %v810_v4 = vld [vmem:[%s1193_s1 + $0xf4] sm:$0xf0]  ;;  %v707_v6 = vld [vmem:[%s1193_s1 + $0x78] sm:$0xf0] }
   0x3   :  { %v770_v7 = vor.u32 %v810_v4, %v769_v2  ;;  %v710_v8 = vor.u32 %v793_v5, %v707_v6  ;;  %v809_v9 = vld [vmem:[%s1193_s1 + $0xf4] sm:$0xf]  ;;  %v771_v10 = vld [vmem:[%s1193_s1 + $0xf8] sm:$0xf0]  ;;  %v697_v11 = vld [vmem:[%s1193_s1 + $0x60] sm:$0xf] }
   0x4   :  { %238 = vmatpush.bf16.msra.mxu0 %v706_v3  ;;  %v774_v12 = vor.u32 %v809_v9, %v771_v10  ;;  %v792_v13 = vld [vmem:[%s1193_s1 + $0x64] sm:$0xf0]  ;;  %v761_v14 = vld [vmem:[%s1193_s1 + $0xe0] sm:$0xf]  ;;  %v791_v18 = vld [vmem:[%s1193_s1 + $0x64] sm:$0xf] }
   0x5   :  { %v808_v15 = vld [vmem:[%s1193_s1 + $0xe4] sm:$0xf0]  ;;  %257 = vmatpush.bf16.msra.mxu1 %v770_v7  ;;  %276 = vmatpush.bf16.msra.mxu2 %v710_v8  ;;  %v698_v16 = vor.u32 %v792_v13, %v697_v11  ;;  %v699_v19 = vld [vmem:[%s1193_s1 + $0x68] sm:$0xf0]  ;;  %v807_v20 = vld [vmem:[%s1193_s1 + $0xe4] sm:$0xf] }
   0x6   :  { %v762_v17 = vor.u32 %v808_v15, %v761_v14  ;;  %295 = vmatpush.bf16.msra.mxu3 %v774_v12  ;;  %v702_v21 = vor.u32 %v791_v18, %v699_v19  ;;  %v763_v22 = vld [vmem:[%s1193_s1 + $0xe8] sm:$0xf0]  ;;  %v689_v23 = vld [vmem:[%s1193_s1 + $0x50] sm:$0xf]  ;;  %v790_v24 = vld [vmem:[%s1193_s1 + $0x54] sm:$0xf0] }
   0x7   :  { %v766_v25 = vor.u32 %v807_v20, %v763_v22  ;;  %v753_v26 = vld [vmem:[%s1193_s1 + $0xd0] sm:$0xf]  ;;  %v806_v27 = vld [vmem:[%s1193_s1 + $0xd4] sm:$0xf0]  ;;  %v789_v28 = vld [vmem:[%s1193_s1 + $0x54] sm:$0xf]  ;;  %v690_v29 = vor.u32 %v790_v24, %v689_v23 }
   0x8   :  { %239 = vmatpush.bf16.msra.mxu0 %v698_v16  ;;  %v691_v30 = vld [vmem:[%s1193_s1 + $0x58] sm:$0xf0]  ;;  %v805_v31 = vld [vmem:[%s1193_s1 + $0xd4] sm:$0xf]  ;;  %v754_v33 = vor.u32 %v806_v27, %v753_v26  ;;  %v681_v35 = vld [vmem:[%s1193_s1 + $0x40] sm:$0xf] }
   0x9   :  { %v755_v32 = vld [vmem:[%s1193_s1 + $0xd8] sm:$0xf0]  ;;  %258 = vmatpush.bf16.msra.mxu1 %v762_v17  ;;  %277 = vmatpush.bf16.msra.mxu2 %v702_v21  ;;  %v694_v34 = vor.u32 %v789_v28, %v691_v30  ;;  %v788_v36 = vld [vmem:[%s1193_s1 + $0x44] sm:$0xf0]  ;;  %v745_v37 = vld [vmem:[%s1193_s1 + $0xc0] sm:$0xf] }
   0xa   :  { %296 = vmatpush.bf16.msra.mxu3 %v766_v25  ;;  %v758_v38 = vor.u32 %v805_v31, %v755_v32  ;;  %v804_v39 = vld [vmem:[%s1193_s1 + $0xc4] sm:$0xf0]  ;;  %v787_v40 = vld [vmem:[%s1193_s1 + $0x44] sm:$0xf]  ;;  %v683_v41 = vld [vmem:[%s1193_s1 + $0x48] sm:$0xf0]  ;;  %v682_v44 = vor.u32 %v788_v36, %v681_v35 }
   0xb   :  { %v803_v42 = vld [vmem:[%s1193_s1 + $0xc4] sm:$0xf]  ;;  %v747_v43 = vld [vmem:[%s1193_s1 + $0xc8] sm:$0xf0]  ;;  %v746_v45 = vor.u32 %v804_v39, %v745_v37  ;;  %v686_v46 = vor.u32 %v787_v40, %v683_v41  ;;  %v673_v47 = vld [vmem:[%s1193_s1 + $0x30] sm:$0xf] }
   0xc   :  { %240 = vmatpush.bf16.msra.mxu0 %v690_v29  ;;  %v786_v48 = vld [vmem:[%s1193_s1 + $0x34] sm:$0xf0]  ;;  %v737_v49 = vld [vmem:[%s1193_s1 + $0xb0] sm:$0xf]  ;;  %v750_v50 = vor.u32 %v803_v42, %v747_v43  ;;  %v785_v52 = vld [vmem:[%s1193_s1 + $0x34] sm:$0xf] }
   0xd   :  { %259 = vmatpush.bf16.msra.mxu1 %v754_v33  ;;  %278 = vmatpush.bf16.msra.mxu2 %v694_v34  ;;  %v802_v51 = vld [vmem:[%s1193_s1 + $0xb4] sm:$0xf0]  ;;  %v675_v53 = vld [vmem:[%s1193_s1 + $0x38] sm:$0xf0]  ;;  %v801_v54 = vld [vmem:[%s1193_s1 + $0xb4] sm:$0xf]  ;;  %v674_v56 = vor.u32 %v786_v48, %v673_v47 }
   0xe   :  { %297 = vmatpush.bf16.msra.mxu3 %v758_v38  ;;  %v739_v55 = vld [vmem:[%s1193_s1 + $0xb8] sm:$0xf0]  ;;  %v738_v57 = vor.u32 %v802_v51, %v737_v49  ;;  %v678_v58 = vor.u32 %v785_v52, %v675_v53  ;;  %v665_v59 = vld [vmem:[%s1193_s1 + $0x20] sm:$0xf]  ;;  %v784_v60 = vld [vmem:[%s1193_s1 + $0x24] sm:$0xf0] }
   0xf   :  { %v729_v61 = vld [vmem:[%s1193_s1 + $0xa0] sm:$0xf]  ;;  %v742_v62 = vor.u32 %v801_v54, %v739_v55  ;;  %v800_v63 = vld [vmem:[%s1193_s1 + $0xa4] sm:$0xf0]  ;;  %v783_v0 = vld [vmem:[%s1193_s1 + $0x24] sm:$0xf]  ;;  %v666_v4 = vor.u32 %v784_v60, %v665_v59 }
  0x10   :  { %241 = vmatpush.bf16.msra.mxu0 %v682_v44  ;;  %v667_v1 = vld [vmem:[%s1193_s1 + $0x28] sm:$0xf0]  ;;  %v799_v2 = vld [vmem:[%s1193_s1 + $0xa4] sm:$0xf]  ;;  %v730_v5 = vor.u32 %v800_v63, %v729_v61  ;;  %v657_v7 = vld [vmem:[%s1193_s1 + $0x10] sm:$0xf] }
  0x11   :  { %260 = vmatpush.bf16.msra.mxu1 %v746_v45  ;;  %279 = vmatpush.bf16.msra.mxu2 %v686_v46  ;;  %v731_v3 = vld [vmem:[%s1193_s1 + $0xa8] sm:$0xf0]  ;;  %v670_v6 = vor.u32 %v783_v0, %v667_v1  ;;  %v782_v8 = vld [vmem:[%s1193_s1 + $0x14] sm:$0xf0]  ;;  %v721_v9 = vld [vmem:[%s1193_s1 + $0x90] sm:$0xf] }
  0x12   :  { %298 = vmatpush.bf16.msra.mxu3 %v750_v50  ;;  %v734_v10 = vor.u32 %v799_v2, %v731_v3  ;;  %v798_v11 = vld [vmem:[%s1193_s1 + $0x94] sm:$0xf0]  ;;  %v781_v12 = vld [vmem:[%s1193_s1 + $0x14] sm:$0xf]  ;;  %v659_v13 = vld [vmem:[%s1193_s1 + $0x18] sm:$0xf0]  ;;  %v658_v16 = vor.u32 %v782_v8, %v657_v7 }
  0x13   :  { %v797_v14 = vld [vmem:[%s1193_s1 + $0x94] sm:$0xf]  ;;  %v723_v15 = vld [vmem:[%s1193_s1 + $0x98] sm:$0xf0]  ;;  %v722_v17 = vor.u32 %v798_v11, %v721_v9  ;;  %v662_v18 = vor.u32 %v781_v12, %v659_v13  ;;  %v649_v19 = vld [vmem:[%s1193_s1] sm:$0xf] }
  0x14   :  { %242 = vmatpush.bf16.msra.mxu0 %v674_v56  ;;  %v780_v20 = vld [vmem:[%s1193_s1 + $0x4] sm:$0xf0]  ;;  %v713_v21 = vld [vmem:[%s1193_s1 + $0x80] sm:$0xf]  ;;  %v726_v22 = vor.u32 %v797_v14, %v723_v15  ;;  %v779_v24 = vld [vmem:[%s1193_s1 + $0x4] sm:$0xf] }
  0x15   :  { %261 = vmatpush.bf16.msra.mxu1 %v738_v57  ;;  %280 = vmatpush.bf16.msra.mxu2 %v678_v58  ;;  %v796_v23 = vld [vmem:[%s1193_s1 + $0x84] sm:$0xf0]  ;;  %v651_v25 = vld [vmem:[%s1193_s1 + $0x8] sm:$0xf0]  ;;  %v795_v26 = vld [vmem:[%s1193_s1 + $0x84] sm:$0xf]  ;;  %v650_v28 = vor.u32 %v780_v20, %v649_v19 }
  0x16   :  { %299 = vmatpush.bf16.msra.mxu3 %v742_v62  ;;  %v715_v27 = vld [vmem:[%s1193_s1 + $0x88] sm:$0xf0]  ;;  %v633_v29 = vld [vmem:[%s1194_s0] sm:$0xf]  ;;  %v776_v30 = vld [vmem:[%s1194_s0 + $0x4] sm:$0xf0]  ;;  %v714_v31 = vor.u32 %v796_v23, %v713_v21  ;;  %v654_v32 = vor.u32 %v779_v24, %v651_v25 }
  0x17   :  { %v775_v33 = vld [vmem:[%s1194_s0 + $0x4] sm:$0xf]  ;;  %v635_v34 = vld [vmem:[%s1194_s0 + $0x8] sm:$0xf0]  ;;  %v718_v35 = vor.u32 %v795_v26, %v715_v27  ;;  %v634_v36 = vor.u32 %v776_v30, %v633_v29  ;;  %v641_v38 = vld [vmem:[%s1194_s0 + $0x10] sm:$0xf] }
  0x18   :  { %243 = vmatpush.bf16.msra.mxu0 %v666_v4  ;;  %v638_v37 = vor.u32 %v775_v33, %v635_v34  ;;  %v778_v39 = vld [vmem:[%s1194_s0 + $0x14] sm:$0xf0]  ;;  %v777_v40 = vld [vmem:[%s1194_s0 + $0x14] sm:$0xf]  ;;  %v643_v41 = vld [vmem:[%s1194_s0 + $0x18] sm:$0xf0] }
  0x19   :  { %262 = vmatpush.bf16.msra.mxu1 %v730_v5  ;;  %281 = vmatpush.bf16.msra.mxu2 %v670_v6  ;;  %v642_v42 = vor.u32 %v778_v39, %v641_v38  ;;  %v646_v43 = vor.u32 %v777_v40, %v643_v41  ;;  %v1076_v46 = vld [vmem:[%s1195_s2] sm:$0x77]  ;;  %s836_s0 = smov 64  }
  0x1a   :  { %300 = vmatpush.bf16.msra.mxu3 %v734_v10  ;;  %v52_v50 = vperm.slane %v1076_v46, 0  ;;  %v53_v55 = vperm.slane %v1076_v46, 4 }
  0x1c   :  { %244 = vmatpush.bf16.msra.mxu0 %v658_v16  ;;  %v56_v52 = vperm.slane %v52_v50, 0  ;;  %v57_v62 = vperm.slane %v53_v55, 0 }
  0x1d   :  { %263 = vmatpush.bf16.msra.mxu1 %v722_v17  ;;  %282 = vmatpush.bf16.msra.mxu2 %v662_v18 }
  0x1e   :  { %301 = vmatpush.bf16.msra.mxu3 %v726_v22 }
  0x20   :  { %245 = vmatpush.bf16.msra.mxu0 %v650_v28 }
  0x21   :  { %264 = vmatpush.bf16.msra.mxu1 %v714_v31  ;;  %283 = vmatpush.bf16.msra.mxu2 %v654_v32 }
  0x22   :  { %302 = vmatpush.bf16.msra.mxu3 %v718_v35 }
  0x23   :  { %246 = vmatmul.bf16.vlgmr.msra.gmra.mxu0 %v634_v36 }
  0x24   :  { %265 = vmatmul.bf16.vlgmr.msra.gmra.mxu1 %v638_v37  ;;  %284 = vmatmul.bf16.vlgmr.msra.gmra.mxu2 %v634_v36 }
  0x25   :  { %303 = vmatmul.bf16.vlgmr.msra.gmra.mxu3 %v638_v37 }
  0x33   :  { %251 = vmatmul.bf16.gmra.mxu0 %v642_v42 }
  0x34   :  { %270 = vmatmul.bf16.gmra.mxu1 %v646_v43  ;;  %289 = vmatmul.bf16.gmra.mxu2 %v642_v42 }
  0x35   :  { %308 = vmatmul.bf16.gmra.mxu3 %v646_v43 }
  0xa0   :  { %v247_v44 = vpop.f32.mrf.mxu0 }
  0xa1   :  { %v266_v45 = vpop.f32.mrf.mxu1  ;;  %v248_v58 = vadd.f32 %v247_v44, %v56_v52 }
  0xa3   :  { %v1082_v63 = vadd.f32 %v266_v45, %v248_v58 }
  0xa5   :  { %v332_v8 = vmul.f32 %v1082_v63, %v1082_v63 }
  0xa7   :  { %v285_v47 = vpop.f32.mrf.mxu2 }
  0xa8   :  { %v304_v48 = vpop.f32.mrf.mxu3  ;;  %v249_v49 = vpop.f32.mrf.mxu0  ;;  %v286_v4 = vadd.f32 %v285_v47, %v57_v62 }
  0xa9   :  { %v268_v51 = vpop.f32.mrf.mxu1  ;;  %v250_v53 = vadd.f32 %v249_v49, %v56_v52 }
  0xaa   :  { %v1099_v17 = vadd.f32 %v304_v48, %v286_v4 }
  0xab   :  { %v1080_v61 = vadd.f32 %v268_v51, %v250_v53 }
  0xac   :  { %v333_v26 = vmul.f32 %v1099_v17, %v1099_v17 }
  0xad   :  { %v334_v2 = vmul.f32 %v1080_v61, %v1080_v61  ;;  %v314_v9 = vadd.f32 %v1080_v61, %v1082_v63 }
  0xaf   :  { %v287_v54 = vpop.f32.mrf.mxu2  ;;  %v340_v14 = vadd.f32 %v334_v2, %v332_v8 }
  0xb0   :  { %v306_v56 = vpop.f32.mrf.mxu3  ;;  %v252_v57 = vpop.f32.mrf.mxu0  ;;  %v288_v1 = vadd.f32 %v287_v54, %v57_v62 }
  0xb1   :  { %v253_v59 = vadd.f32 %v252_v57, %v56_v52  ;;  %v271_v60 = vpop.f32.mrf.mxu1 }
  0xb2   :  { %v1094_v12 = vadd.f32 %v306_v56, %v288_v1 }
  0xb3   :  { %v1084_v0 = vadd.f32 %v271_v60, %v253_v59 }
  0xb4   :  { %v335_v22 = vmul.f32 %v1094_v12, %v1094_v12  ;;  %v323_v27 = vadd.f32 %v1094_v12, %v1099_v17 }
  0xb5   :  { %v336_v10 = vmul.f32 %v1084_v0, %v1084_v0  ;;  %v315_v15 = vadd.f32 %v314_v9, %v1084_v0 }
  0xb6   :  { %v349_v33 = vadd.f32 %v335_v22, %v333_v26 }
  0xb7   :  { %v290_v3 = vpop.f32.mrf.mxu2  ;;  %v341_v19 = vadd.f32 %v340_v14, %v336_v10 }
  0xb8   :  { %v291_v5 = vadd.f32 %v290_v3, %v57_v62  ;;  %v309_v6 = vpop.f32.mrf.mxu3  ;;  %v254_v7 = vpop.f32.mrf.mxu0 }
  0xb9   :  { %v255_v11 = vadd.f32 %v254_v7, %v56_v52  ;;  %v273_v13 = vpop.f32.mrf.mxu1 }
  0xba   :  { %v1101_v18 = vadd.f32 %v309_v6, %v291_v5 }
  0xbb   :  { %v1097_v16 = vadd.f32 %v273_v13, %v255_v11 }
  0xbc   :  { %v337_v28 = vmul.f32 %v1101_v18, %v1101_v18  ;;  %v324_v34 = vadd.f32 %v323_v27, %v1101_v18 }
  0xbd   :  { %v316_v20 = vadd.f32 %v315_v15, %v1097_v16  ;;  %v338_v21 = vmul.f32 %v1097_v16, %v1097_v16 }
  0xbe   :  { %v350_v38 = vadd.f32 %v349_v33, %v337_v28 }
  0xbf   :  { %v317_v23 = vrot.slane %v316_v20, 4  ;;  %v342_v24 = vadd.f32 %v341_v19, %v338_v21  ;;  %v292_v25 = vpop.f32.mrf.mxu2 }
  0xc0   :  { %v293_v29 = vadd.f32 %v292_v25, %v57_v62  ;;  %v311_v31 = vpop.f32.mrf.mxu3 }
  0xc1   :  { %v343_v30 = vrot.slane %v342_v24, 4  ;;  %v318_v32 = vadd.f32 %v317_v23, %v316_v20 }
  0xc2   :  { %v1115_v35 = vadd.f32 %v311_v31, %v293_v29 }
  0xc3   :  { %v319_v36 = vrot.slane %v318_v32, 2  ;;  %v344_v37 = vadd.f32 %v343_v30, %v342_v24 }
  0xc4   :  { %v325_v39 = vadd.f32 %v324_v34, %v1115_v35  ;;  %v339_v40 = vmul.f32 %v1115_v35, %v1115_v35 }
  0xc5   :  { %v320_v41 = vadd.f32 %v319_v36, %v318_v32  ;;  %v345_v42 = vrot.slane %v344_v37, 2 }
  0xc6   :  { %v326_v43 = vrot.slane %v325_v39, 4  ;;  %v351_v44 = vadd.f32 %v350_v38, %v339_v40 }
  0xc7   :  { %v321_v45 = vrot.slane %v320_v41, 1  ;;  %v346_v47 = vadd.f32 %v345_v42, %v344_v37 }
  0xc8   :  { %v352_v48 = vrot.slane %v351_v44, 4  ;;  %v327_v49 = vadd.f32 %v326_v43, %v325_v39 }
  0xc9   :  { %v322_v50 = vadd.f32 %v321_v45, %v320_v41  ;;  %v347_v54 = vrot.slane %v346_v47, 1 }
  0xca   :  { %v328_v51 = vrot.slane %v327_v49, 2  ;;  %v353_v52 = vadd.f32 %v352_v48, %v351_v44 }
  0xcb   :  { %411 = vrot.lane.b32.xlu0 %v322_v50, %s836_s0  ;;  %v362_v53 = vsel %vm361_vm0, %v322_v50, 0.0  ;;  %v348_v58 = vadd.f32 %v347_v54, %v346_v47 }
  0xcc   :  { %363 = vadd.xlane.f32.xlu2 %v362_v53  ;;  %v329_v55 = vadd.f32 %v328_v51, %v327_v49  ;;  %v354_v56 = vrot.slane %v353_v52, 2 }
  0xcd   :  { %v374_v62 = vsel %vm361_vm0, %v348_v58, 0.0 }
  0xce   :  { %v330_v57 = vrot.slane %v329_v55, 1  ;;  %v355_v60 = vadd.f32 %v354_v56, %v353_v52 }
  0xd0   :  { %v331_v59 = vadd.f32 %v330_v57, %v329_v55  ;;  %v356_v1 = vrot.slane %v355_v60, 1 }
  0xd2   :  { %515 = vrot.lane.b32.xlu1 %v331_v59, %s836_s0  ;;  %v357_v2 = vadd.f32 %v356_v1, %v355_v60  ;;  %v466_v3 = vsel %vm361_vm0, %v331_v59, 0.0 }
  0xd3   :  { %427 = vrot.lane.b32.xlu0 %v348_v58, %s836_s0 }
  0xd4   :  { %375 = vadd.xlane.f32.xlu2 %v374_v62  ;;  %v478_v4 = vsel %vm361_vm0, %v357_v2, 0.0 }
  0xda   :  { %531 = vrot.lane.b32.xlu1 %v357_v2, %s836_s0 }
  0xdc   :  { %467 = vadd.xlane.f32.xlu2 %v466_v3 }
  0xe4   :  { %479 = vadd.xlane.f32.xlu2 %v478_v4 }
 0x13d   :  { %v412_v5 = vpop.permute.xlu0 %411 }
 0x13e   :  { %v414_v6 = vsel %vm361_vm0, %v412_v5, 0.0 }
 0x13f   :  { %415 = vadd.xlane.f32.xlu0 %v414_v6  ;;  %v364_v7 = vpop.xlane.xlu2 %363 }
 0x140   :  { %v365_v8 = vrot.slane %v364_v7, 4 }
 0x142   :  { %v366_v9 = vadd.f32 %v365_v8, %v364_v7 }
 0x144   :  { %v367_v10 = vrot.slane %v366_v9, 2  ;;  %v516_v11 = vpop.permute.xlu1 %515 }
 0x145   :  { %v428_v13 = vpop.permute.xlu0 %427  ;;  %v518_v14 = vsel %vm361_vm0, %v516_v11, 0.0 }
 0x146   :  { %519 = vadd.xlane.f32.xlu2 %v518_v14  ;;  %v430_v15 = vsel %vm361_vm0, %v428_v13, 0.0  ;;  %v368_v19 = vadd.f32 %v367_v10, %v366_v9 }
 0x147   :  { %431 = vadd.xlane.f32.xlu1 %v430_v15  ;;  %v376_v20 = vpop.xlane.xlu2 %375 }
 0x148   :  { %v377_v21 = vrot.slane %v376_v20, 4  ;;  %v369_v22 = vrot.slane %v368_v19, 1 }
 0x14a   :  { %v378_v23 = vadd.f32 %v377_v21, %v376_v20  ;;  %v370_v24 = vadd.f32 %v369_v22, %v368_v19 }
 0x14c   :  { %v379_v25 = vrot.slane %v378_v23, 2  ;;  %v532_v26 = vpop.permute.xlu1 %531  ;;  %811 = vpush %v370_v24 }
 0x14d   :  { %v534_v27 = vsel %vm361_vm0, %v532_v26, 0.0 }
 0x14e   :  { %535 = vadd.xlane.f32.xlu2 %v534_v27  ;;  %v380_v28 = vadd.f32 %v379_v25, %v378_v23 }
 0x14f   :  { %v468_v31 = vpop.xlane.xlu2 %467 }
 0x150   :  { %v381_v29 = vrot.slane %v380_v28, 1  ;;  %v469_v33 = vrot.slane %v468_v31, 4 }
 0x152   :  { %v382_v30 = vadd.f32 %v381_v29, %v380_v28  ;;  %v470_v39 = vadd.f32 %v469_v33, %v468_v31 }
 0x154   :  { %813 = vpush %v382_v30  ;;  %v471_v44 = vrot.slane %v470_v39, 2 }
 0x156   :  { %v472_v55 = vadd.f32 %v471_v44, %v470_v39 }
 0x157   :  { %v480_v32 = vpop.xlane.xlu2 %479 }
 0x158   :  { %v481_v36 = vrot.slane %v480_v32, 4  ;;  %v473_v1 = vrot.slane %v472_v55, 1 }
 0x15a   :  { %v482_v40 = vadd.f32 %v481_v36, %v480_v32  ;;  %v474_v8 = vadd.f32 %v473_v1, %v472_v55  ;;  %v358_v1 = vlaneseq }
 0x15c   :  { %v483_v48 = vrot.slane %v482_v40, 2 }
 0x15e   :  { %v484_v57 = vadd.f32 %v483_v48, %v482_v40 }
 0x160   :  { %v485_v3 = vrot.slane %v484_v57, 1 }
 0x162   :  { %v486_v9 = vadd.f32 %v485_v3, %v484_v57 }
 0x17d   :  { %s812_s2 = spop %811 }
 0x17e   :  { %v372_v15 = vstv %s812_s2 }
 0x17f   :  { %v1128_v20 = vmul.f32 0.00048828125, %v372_v15 }
 0x181   :  { %v386_v22 = vmul.f32 %v1128_v20, %v1128_v20 }
 0x185   :  { %s814_s22 = spop %813 }
 0x186   :  { %v384_v19 = vstv %s814_s22 }
 0x187   :  { %v385_v21 = vmul.f32 0.00048828125, %v384_v19 }
 0x189   :  { %v387_v23 = vsub.f32 %v385_v21, %v386_v22 }
 0x18b   :  { %v388_v24 = vmax.f32 %v387_v23, 0.0 }
 0x18d   :  { %v389_v25 = vadd.f32 1e-05, %v388_v24 }
 0x18f   :  { %828 = vrsqrt.f32 %v389_v25  ;;  %vm396_vm2 = vweird.f32 %v389_v25 }
 0x1b2   :  { %v416_v34 = vpop.xlane.xlu0 %415 }
 0x1b3   :  { %v417_v37 = vrot.slane %v416_v34, 4 }
 0x1b5   :  { %v418_v38 = vadd.f32 %v417_v37, %v416_v34  ;;  %v829_v37 = vpop.eup %828 }
 0x1b6   :  { %vm397_vm1 = vweird.f32 %v829_v37 }
 0x1b7   :  { %v419_v41 = vrot.slane %v418_v38, 2  ;;  %vm398_vm4 = vmor %vm396_vm2, %vm397_vm1  ;;  %vm581_vm1 = vcmask 1043456  }
 0x1b9   :  { %v420_v42 = vadd.f32 %v419_v41, %v418_v38  ;;  %v520_v43 = vpop.xlane.xlu2 %519 }
 0x1ba   :  { %v521_v45 = vrot.slane %v520_v43, 4  ;;  %v432_v47 = vpop.xlane.xlu1 %431 }
 0x1bb   :  { %v433_v49 = vrot.slane %v432_v47, 4  ;;  %v421_v50 = vrot.slane %v420_v42, 1 }
 0x1bc   :  { %v522_v51 = vadd.f32 %v521_v45, %v520_v43  ;;  %v391_v43 = vmul.f32 %v829_v37, %v389_v25 }
 0x1bd   :  { %v434_v52 = vadd.f32 %v433_v49, %v432_v47  ;;  %v422_v53 = vadd.f32 %v421_v50, %v420_v42 }
 0x1be   :  { %v523_v54 = vrot.slane %v522_v51, 2 }
 0x1bf   :  { %v435_v56 = vrot.slane %v434_v52, 2  ;;  %815 = vpush %v422_v53 }
 0x1c0   :  { %v524_v58 = vadd.f32 %v523_v54, %v522_v51 }
 0x1c1   :  { %v436_v59 = vadd.f32 %v435_v56, %v434_v52  ;;  %v536_v60 = vpop.xlane.xlu2 %535  ;;  %v392_v52 = vmul.f32 %v829_v37, %v391_v43 }
 0x1c2   :  { %v537_v62 = vrot.slane %v536_v60, 4  ;;  %v525_v5 = vrot.slane %v524_v58, 1 }
 0x1c3   :  { %v437_v2 = vrot.slane %v436_v59, 1  ;;  %v393_v56 = vmul.f32 0.5, %v392_v52 }
 0x1c4   :  { %v538_v4 = vadd.f32 %v537_v62, %v536_v60  ;;  %v526_v11 = vadd.f32 %v525_v5, %v524_v58 }
 0x1c5   :  { %v438_v6 = vadd.f32 %v437_v2, %v436_v59  ;;  %v394_v60 = vsub.f32 1.5, %v393_v56 }
 0x1c6   :  { %v539_v7 = vrot.slane %v538_v4, 2 }
 0x1c7   :  { %817 = vpush %v438_v6  ;;  %v395_v6 = vmul.f32 %v829_v37, %v394_v60 }
 0x1c8   :  { %v540_v10 = vadd.f32 %v539_v7, %v538_v4  ;;  %819 = vpush %v474_v8 }
 0x1c9   :  { %821 = vpush %v486_v9  ;;  %v359_v9 = vand.u32 127, %v358_v1  ;;  %v399_v15 = vsel %vm398_vm4, %v829_v37, %v395_v6 }
 0x1ca   :  { %823 = vpush %v526_v11  ;;  %v541_v13 = vrot.slane %v540_v10, 1 }
 0x1cb   :  { %vm402_vm9 = vcmp.lt.s32.totalorder %v359_v9, 64  ;;  %vm456_vm12 = vcmp.ge.s32.totalorder %v359_v9, 64 }
 0x1cc   :  { %v542_v14 = vadd.f32 %v541_v13, %v540_v10  ;;  %v408_v25 = vsel %vm402_vm9, %v399_v15, 0.0 }
 0x1ce   :  { %825 = vpush %v542_v14  ;;  %v360_v14 = vadd.s32 128, %v359_v9 }
 0x1d0   :  { %vm507_vm13 = vcmp.lt.s32.totalorder %v360_v14, 192  ;;  %vm561_vm0 = vcmp.ge.s32.totalorder %v360_v14, 192 }
 0x1f0   :  { %s816_s23 = spop %815 }
 0x1f1   :  { %v424_v26 = vstv %s816_s23 }
 0x1f2   :  { %v1132_v27 = vmul.f32 0.00048828125, %v424_v26 }
 0x1f4   :  { %v442_v29 = vmul.f32 %v1132_v27, %v1132_v27 }
 0x1f8   :  { %s818_s24 = spop %817 }
 0x1f9   :  { %v440_v28 = vstv %s818_s24  ;;  %s820_s25 = spop %819 }
 0x1fa   :  { %v441_v30 = vmul.f32 0.00048828125, %v440_v28  ;;  %v476_v31 = vstv %s820_s25  ;;  %s822_s26 = spop %821  ;;  %v570_v28 = vperm.slane %v1076_v46, 1 }
 0x1fb   :  { %v1136_v32 = vmul.f32 0.00048828125, %v476_v31  ;;  %v488_v33 = vstv %s822_s26  ;;  %s824_s27 = spop %823 }
 0x1fc   :  { %v443_v34 = vsub.f32 %v441_v30, %v442_v29  ;;  %v528_v36 = vstv %s824_s27  ;;  %v489_v39 = vmul.f32 0.00048828125, %v488_v33  ;;  %v571_v30 = vperm.slane %v1076_v46, 5 }
 0x1fd   :  { %v490_v38 = vmul.f32 %v1136_v32, %v1136_v32  ;;  %v1140_v40 = vmul.f32 0.00048828125, %v528_v36  ;;  %v511_v33 = vsel %vm507_vm13, %v1136_v32, 0.0 }
 0x1fe   :  { %v444_v41 = vmax.f32 %v443_v34, 0.0 }
 0x1ff   :  { %v491_v42 = vsub.f32 %v489_v39, %v490_v38  ;;  %s826_s28 = spop %825  ;;  %v546_v48 = vmul.f32 %v1140_v40, %v1140_v40 }
 0x200   :  { %v445_v44 = vadd.f32 1e-05, %v444_v41  ;;  %v544_v45 = vstv %s826_s28  ;;  %v567_v41 = vsel %vm561_vm0, %v1140_v40, %v511_v33 }
 0x201   :  { %v492_v47 = vmax.f32 %v491_v42, 0.0  ;;  %v545_v49 = vmul.f32 0.00048828125, %v544_v45  ;;  %v406_v42 = vsel %vm402_vm9, %v1128_v20, 0.0 }
 0x202   :  { %830 = vrsqrt.f32 %v445_v44  ;;  %vm452_vm6 = vweird.f32 %v445_v44 }
 0x203   :  { %v493_v50 = vadd.f32 1e-05, %v492_v47  ;;  %v547_v51 = vsub.f32 %v545_v49, %v546_v48 }
 0x205   :  { %832 = vrsqrt.f32 %v493_v50  ;;  %v548_v53 = vmax.f32 %v547_v51, 0.0  ;;  %vm500_vm8 = vweird.f32 %v493_v50 }
 0x207   :  { %v549_v54 = vadd.f32 1e-05, %v548_v53 }
 0x208   :  { %v831_v55 = vpop.eup %830 }
 0x209   :  { %v447_v57 = vmul.f32 %v831_v55, %v445_v44  ;;  %834 = vrsqrt.f32 %v549_v54  ;;  %vm453_vm3 = vweird.f32 %v831_v55  ;;  %vm556_vm14 = vweird.f32 %v549_v54 }
 0x20a   :  { %vm1144_vm7 = vmor %vm452_vm6, %vm453_vm3  ;;  %v462_v44 = vsel %vm456_vm12, %v1132_v27, %v406_v42 }
 0x20b   :  { %v833_v58 = vpop.eup %832  ;;  %v448_v59 = vmul.f32 %v831_v55, %v447_v57 }
 0x20c   :  { %v495_v62 = vmul.f32 %v833_v58, %v493_v50  ;;  %vm501_vm5 = vweird.f32 %v833_v58 }
 0x20d   :  { %v449_v2 = vmul.f32 0.5, %v448_v59  ;;  %vm502_vm10 = vmor %vm500_vm8, %vm501_vm5 }
 0x20e   :  { %v496_v3 = vmul.f32 %v833_v58, %v495_v62 }
 0x20f   :  { %v835_v4 = vpop.eup %834  ;;  %v450_v5 = vsub.f32 1.5, %v449_v2 }
 0x210   :  { %v497_v7 = vmul.f32 0.5, %v496_v3  ;;  %v551_v8 = vmul.f32 %v835_v4, %v549_v54  ;;  %vm557_vm11 = vweird.f32 %v835_v4 }
 0x211   :  { %v451_v10 = vmul.f32 %v831_v55, %v450_v5  ;;  %vm558_vm15 = vmor %vm556_vm14, %vm557_vm11 }
 0x212   :  { %v498_v11 = vsub.f32 1.5, %v497_v7  ;;  %v552_v13 = vmul.f32 %v835_v4, %v551_v8 }
 0x213   :  { %v455_v23 = vsel %vm1144_vm7, %v831_v55, %v451_v10 }
 0x214   :  { %v499_v19 = vmul.f32 %v833_v58, %v498_v11  ;;  %v553_v21 = vmul.f32 0.5, %v552_v13  ;;  %v464_v31 = vsel %vm456_vm12, %v455_v23, %v408_v25 }
 0x215   :  { %v574_v38 = vmul.f32 %v570_v28, %v464_v31 }
 0x216   :  { %v554_v24 = vsub.f32 1.5, %v553_v21  ;;  %v503_v26 = vsel %vm502_vm10, %v833_v58, %v499_v19 }
 0x217   :  { %v513_v34 = vsel %vm507_vm13, %v503_v26, 0.0  ;;  %v576_v45 = vmul.f32 %v574_v38, %v462_v44  ;;  %v586_v49 = vperm.slane %v574_v38, 0 }
 0x218   :  { %v555_v29 = vmul.f32 %v835_v4, %v554_v24 }
 0x219   :  { %v588_v40 = vmul.f32 %v586_v49, %v1082_v63  ;;  %v590_v54 = vmul.f32 %v586_v49, %v1080_v61  ;;  %v592_v57 = vmul.f32 %v586_v49, %v1084_v0  ;;  %v594_v58 = vmul.f32 %v586_v49, %v1097_v16 }
 0x21a   :  { %v559_v36 = vsel %vm558_vm15, %v835_v4, %v555_v29 }
 0x21b   :  { %v569_v37 = vsel %vm561_vm0, %v559_v36, %v513_v34 }
 0x21c   :  { %v575_v39 = vmul.f32 %v571_v30, %v569_v37 }
 0x21e   :  { %v577_v43 = vmul.f32 %v575_v39, %v567_v41  ;;  %v587_v51 = vperm.slane %v575_v39, 0 }
 0x220   :  { %v580_v47 = vrot.slane %v577_v43, 4  ;;  %v589_v20 = vmul.f32 %v587_v51, %v1099_v17  ;;  %v591_v55 = vmul.f32 %v587_v51, %v1094_v12  ;;  %v593_v59 = vmul.f32 %v587_v51, %v1101_v18 }
 0x221   :  { %v595_v63 = vmul.f32 %v587_v51, %v1115_v35 }
 0x222   :  { %v582_v48 = vsel %vm581_vm1, %v576_v45, %v580_v47 }
 0x223   :  { %v583_v32 = vrot.slane %v582_v48, 6 }
 0x225   :  { %v585_v50 = vsub.f32 %v1076_v46, %v583_v32 }
 0x227   :  { %v597_v52 = vperm.slane %v585_v50, 2  ;;  %v598_v53 = vperm.slane %v585_v50, 6 }
 0x229   :  { %v601_v27 = vperm.slane %v597_v52, 2  ;;  %v602_v56 = vperm.slane %v598_v53, 2 }
 0x22b   :  { %v603_v46 = vadd.f32 %v601_v27, %v588_v40  ;;  %v604_v60 = vadd.f32 %v602_v56, %v589_v20  ;;  %v605_v62 = vadd.f32 %v601_v27, %v590_v54  ;;  %v606_v1 = vadd.f32 %v602_v56, %v591_v55 }
 0x22c   :  { %v607_v2 = vadd.f32 %v601_v27, %v592_v57  ;;  %v608_v61 = vadd.f32 %v602_v56, %v593_v59  ;;  %v609_v3 = vadd.f32 %v601_v27, %v594_v58  ;;  %v610_v5 = vadd.f32 %v602_v56, %v595_v63 }
 0x22d   :  { %v611_v17 = vmax.f32 %v603_v46, 0.0  ;;  %v612_v4 = vmax.f32 %v604_v60, 0.0  ;;  %v613_v12 = vmax.f32 %v605_v62, 0.0  ;;  %v614_v6 = vmax.f32 %v606_v1, 0.0 }
 0x22e   :  { %v615_v7 = vmax.f32 %v607_v2, 0.0  ;;  %v616_v0 = vmax.f32 %v608_v61, 0.0  ;;  %v617_v16 = vmax.f32 %v609_v3, 0.0  ;;  %v618_v18 = vmax.f32 %v610_v5, 0.0 }
 0x22f   :  { %619 = vst [vmem:[%s1196_s3] sm:$0xff] %v611_v17 }
 0x230   :  { %620 = vst [vmem:[%s1196_s3 + $0x8] sm:$0xff] %v612_v4 }
 0x231   :  { %621 = vst [vmem:[%s1196_s3 + $0x10] sm:$0xff] %v613_v12 }
 0x232   :  { %622 = vst [vmem:[%s1196_s3 + $0x18] sm:$0xff] %v614_v6 }
 0x233   :  { %623 = vst [vmem:[%s1196_s3 + $0x20] sm:$0xff] %v615_v7 }
 0x234   :  { %624 = vst [vmem:[%s1196_s3 + $0x28] sm:$0xff] %v616_v0 }
 0x235   :  { %625 = vst [vmem:[%s1196_s3 + $0x30] sm:$0xff] %v617_v16 }
 0x236   :  { %626 = vst [vmem:[%s1196_s3 + $0x38] sm:$0xff] %v618_v18 }

</bundles_post_ra>
